<compile_context>
chip_gen: v7x
topology: tpu7x:2x2x1
jax: 0.10.0
libtpu: 0.0.40
codegen_flags: <defaults>
</compile_context>

<pallas_src>
import jax
import jax.numpy as jnp
from jax.experimental import pallas as pl
from jax.experimental.pallas import tpu as pltpu


def _dma_fold_kernel(x_hbm, o_hbm, sem):
    # Both refs stay in HBM (memory_space=pl.ANY): copy the already
    # row-major-contiguous slab with a single DMA.  No VMEM, no vreg traffic.
    cp = pltpu.make_async_copy(x_hbm, o_hbm, sem)
    cp.start()
    cp.wait()


def _noop_alias_kernel(x_hbm, o_hbm):
    # Output buffer IS the input buffer (input_output_aliases={0: 0}); data is
    # already in place, so only pin an ordering dependency on the aliased out.
    del x_hbm
    pltpu.touch(o_hbm)


def fold_time(x, *, donate=False):
    """(B, T, *rest) -> (B*T, *rest), identical data order to torch .view.

    donate=False (default): output is a fresh buffer filled by one HBM->HBM DMA.
    donate=True:            output aliases x's buffer (zero data movement); the
                            input is donated.
    """
    B, T = x.shape[0], x.shape[1]
    rest = x.shape[2:]
    N = B * T
    K = 1
    for d in rest:
        K *= d
    out_shape_nd = (N, *rest)

    if N * K == 0:
        return jnp.reshape(x, out_shape_nd)

    # Free, metadata-only reshape to a contiguous 2-D slab.
    x2 = jnp.reshape(x, (N, K))
    itemsize = jnp.dtype(x.dtype).itemsize

    if donate:
        out2 = pl.pallas_call(
            _noop_alias_kernel,
            out_shape=jax.ShapeDtypeStruct((N, K), x.dtype),
            in_specs=[pl.BlockSpec(memory_space=pl.ANY)],
            out_specs=pl.BlockSpec(memory_space=pl.ANY),
            input_output_aliases={0: 0},
            compiler_params=pltpu.CompilerParams(has_side_effects=True),
            cost_estimate=pl.CostEstimate(
                flops=0, transcendentals=0, bytes_accessed=0),
        )(x2)
    else:
        out2 = pl.pallas_call(
            _dma_fold_kernel,
            out_shape=jax.ShapeDtypeStruct((N, K), x.dtype),
            in_specs=[pl.BlockSpec(memory_space=pl.ANY)],
            out_specs=pl.BlockSpec(memory_space=pl.ANY),
            scratch_shapes=[pltpu.SemaphoreType.DMA(())],
            # Pure memory op: 1 read + 1 write of the whole tensor, zero flops.
            cost_estimate=pl.CostEstimate(
                flops=0, transcendentals=0,
                bytes_accessed=2 * N * K * itemsize),
        )(x2)

    # Free reshape back to the folded N-D shape.
    return jnp.reshape(out2, out_shape_nd)


if __name__ == "__main__":
    key = jax.random.PRNGKey(0)
    B, T, C, H, W = 2, 4, 4, 16, 16  # FoldTime(T=4) applied to (B, T, C, H, W)
    x = jax.random.normal(key, (B, T, C, H, W), dtype=jnp.float32)

    out = fold_time(x)  # default: HBM->HBM DMA copy path
    out = jax.block_until_ready(out)

    # Reference: torch's .view(B*T, C, H, W) == row-major reshape.
    ref = jnp.reshape(x, (B * T, C, H, W))
    assert out.shape == (B * T, C, H, W), out.shape
    assert out.dtype == x.dtype
    assert bool(jnp.array_equal(out, ref)), "mismatch vs reshape reference"

    print("KERNEL_OK")
</pallas_src>

<mosaic_0001>
module attributes {stable_mosaic.version = 11 : i64} {
  func.func @_dma_fold_kernel(%arg0: memref<8x1024xf32, #tpu.memory_space<any>>, %arg1: memref<8x1024xf32, #tpu.memory_space<any>>, %arg2: memref<!tpu.dma_semaphore, #tpu.memory_space<semaphore_mem>>) attributes {dimension_semantics = [], scalar_prefetch = 0 : i64, scratch_operands = 1 : i64, tpu.core_type = #tpu.core_type<tc>} {
    tpu.enqueue_dma source(%arg0 : memref<8x1024xf32, #tpu.memory_space<any>>) target(%arg1 : memref<8x1024xf32, #tpu.memory_space<any>>) target_semaphore(%arg2 : memref<!tpu.dma_semaphore, #tpu.memory_space<semaphore_mem>>)
    tpu.wait_dma2 semaphore(%arg2 : memref<!tpu.dma_semaphore, #tpu.memory_space<semaphore_mem>>) src(%arg0 : memref<8x1024xf32, #tpu.memory_space<any>>) dst(%arg1 : memref<8x1024xf32, #tpu.memory_space<any>>)
    return
  }
}

</mosaic_0001>

<bundles_post_ra>
// kernel: tpu_custom_call.1
= control target key start
LH: loop header
LB: loop body
LE: loop exit
PB: predicated region body
PF: predicated region fallthrough
CT: control target
= control target key end

     0   :  { %s35_s6 = smov [#allocation2]   ;;  %s36_s7 = smov [#allocation3]   ;;  %s54_s0 = inlined_call_operand.hbm [shape: f32[8,1024], index: 0, kind: input, shape index: {}]   ;;  %s55_s1 = inlined_call_operand.hbm [shape: f32[8,1024], index: 1, kind: output, shape index: {}]  }
   0x1   :  { %s37_s8 = smov 0  }
   0x2   :  { %18 = dma.general %s54_s0, 1024, %s55_s1, %s35_s6, %s36_s7, [#allocation4], %s37_s8, 0  }
   0x3   :  { %33 = dma.done.wait [#allocation2], 1024 }
   0x4   :  { %34 = vsyncadd [#allocation2], 4294966272 }
   0x5   :  { %23 = vsyncmov [#allocation2] }
   0x8   :  { %s24_s13 = vpop.sfrf %23 }
   0x9   :  { %p29_p0 = scmp.ne.s32.totalorder %s24_s13, 0 }
   0xb   :  { %28 = shalt.err (%p29_p0)  }

</bundles_post_ra>
